<compile_context>
chip_gen: v5e
topology: v5e:2x2
jax: 0.10.0
libtpu: 0.0.40
codegen_flags: <defaults>
</compile_context>

<pallas_src>
import jax
import jax.numpy as jnp
import numpy as np
from jax.experimental import pallas as pl
from jax.experimental.pallas import tpu as pltpu

# HalfCheetah-v4 dims
STATE_DIM = 17
ACTION_DIM = 6
HIDDEN = 256
T_STEPS = 25
SA_DIM = STATE_DIM + ACTION_DIM          # 23
IN_DIM = SA_DIM + HIDDEN                 # 279 (original layer-1 fan-in)
IN_PACK = 64                             # packed layer-1 fan-in (state|action|one-hot|pad|t)
T_LANE = IN_PACK - 1                     # lane carrying t (weight row is zero)
OUT_PAD = 128                            # lane-dense padded output width
MAX_BLOCK_B = 1024                       # rows per grid step cap

_BLOCK_LADDER = (8, 16, 32, 64, 128, 256, 512, MAX_BLOCK_B)


def _round_up(x, m):
    return (x + m - 1) // m * m


def _choose_block(batch):
    """Pick (rows_per_block, padded_batch).

    Balances per-grid-step fixed overhead (~0.35us) against wasted padded rows
    (~2ns/row of compute+writeback), with a mild penalty for single-block grids
    so a v7x megacore has >=2 blocks to shard across its two TensorCores.
    """
    best = None
    for bb in _BLOCK_LADDER:
        b_pad = _round_up(batch, bb)
        n_blocks = b_pad // bb
        waste = b_pad - batch
        cost = 350.0 * n_blocks + 2.0 * waste + (400.0 if n_blocks == 1 else 0.0)
        if best is None or cost < best[0]:
            best = (cost, bb, b_pad)
    return best[1], best[2]


def _actor_kernel(x_ref, w1_ref, b1_ref, w2_ref, b2_ref, w3_ref, b3_ref, o_ref):
    bb = x_ref.shape[0]

    # ---- layer 1: single bf16 [bb,64] @ [64,256] matmul -----------------------
    x = x_ref[...]                                                   # [bb, 64] bf16
    # t is carried exactly as a bf16 integer in lane T_LANE (its weight row is zero,
    # so it contributes nothing to the matmul).  Build the embedding one-hot by
    # adding 1.0 into the (zero) lane SA_DIM + t.
    t = x[:, T_LANE:T_LANE + 1].astype(jnp.int32)                    # [bb, 1]
    lane = jax.lax.broadcasted_iota(jnp.int32, (bb, IN_PACK), 1)     # [bb, 64]
    x = x + (lane == t + SA_DIM).astype(jnp.bfloat16)

    h1 = jnp.dot(x, w1_ref[...], preferred_element_type=jnp.float32) + b1_ref[...]
    h1 = jnp.maximum(h1, 0.0)

    # ---- layer 2 --------------------------------------------------------------
    h2 = jnp.dot(h1.astype(jnp.bfloat16), w2_ref[...],
                 preferred_element_type=jnp.float32) + b2_ref[...]
    h2 = jnp.maximum(h2, 0.0)

    # ---- layer 3 (output lanes zero-padded 6 -> 128, lane-dense bf16 store) ----
    y = jnp.dot(h2.astype(jnp.bfloat16), w3_ref[...],
                preferred_element_type=jnp.float32) + b3_ref[...]
    o_ref[...] = y.astype(jnp.bfloat16)


def _pack_inputs(state, action_noise, t, b_pad):
    """One lane-dense bf16 slab per row: [state | action | zeros | t]."""
    B = state.shape[0]
    x = jnp.concatenate(
        [state.astype(jnp.bfloat16),                                  # lanes 0..16
         action_noise.astype(jnp.bfloat16),                           # lanes 17..22
         jnp.zeros((B, T_LANE - SA_DIM), jnp.bfloat16),               # lanes 23..62 (one-hot region)
         t.reshape(B, 1).astype(jnp.bfloat16)],                       # lane 63 (t, exact in bf16)
        axis=1)
    if b_pad != B:
        x = jnp.pad(x, ((0, b_pad - B), (0, 0)))
    return x


def diffusion_actor_forward(state, action_noise, t, folded):
    """self.net(cat([state, action_noise, time_embed(t)], 1)) as one Pallas kernel."""
    w1c, b1f, w2, b2, w3, b3 = folded
    B = state.shape[0]

    bb, b_pad = _choose_block(B)
    x = _pack_inputs(state, action_noise, t.astype(jnp.int32), b_pad)

    row_spec = lambda i: (i, 0)     # batch-blocked arrays
    whole = lambda i: (0, 0)        # weights: same block every step -> stay VMEM-resident

    flops = 2 * b_pad * (IN_PACK * HIDDEN + HIDDEN * HIDDEN + HIDDEN * OUT_PAD)
    bytes_accessed = (2 * (w1c.size + w2.size + w3.size)              # bf16 weights
                      + 4 * (b1f.size + b2.size + b3.size)            # f32 biases
                      + 2 * b_pad * (IN_PACK + OUT_PAD))              # bf16 activations

    out = pl.pallas_call(
        _actor_kernel,
        out_shape=jax.ShapeDtypeStruct((b_pad, OUT_PAD), jnp.bfloat16),
        grid=(b_pad // bb,),
        in_specs=[
            pl.BlockSpec((bb, IN_PACK), row_spec),   # packed [state|action|...|t] slab (bf16)
            pl.BlockSpec(w1c.shape, whole),          # combined layer-1 weight [64,256] (bf16)
            pl.BlockSpec(b1f.shape, whole),          # b1 (f32)
            pl.BlockSpec(w2.shape, whole),           # W2 (bf16)
            pl.BlockSpec(b2.shape, whole),           # b2 (f32)
            pl.BlockSpec(w3.shape, whole),           # W3 padded to 128 lanes (bf16)
            pl.BlockSpec(b3.shape, whole),           # b3 padded to 128 lanes (f32)
        ],
        out_specs=pl.BlockSpec((bb, OUT_PAD), row_spec),
        compiler_params=pltpu.CompilerParams(dimension_semantics=("parallel",)),
        cost_estimate=pl.CostEstimate(flops=flops, transcendentals=0,
                                      bytes_accessed=bytes_accessed),
    )(x, w1c, b1f, w2, b2, w3, b3)

    return out[:B, :ACTION_DIM].astype(jnp.float32)


forward = jax.jit(diffusion_actor_forward)


# ------------------------------ parameters ------------------------------------

def init_raw_params(key):
    """PyTorch-equivalent init. Linear weights stored [in, out] (transposed vs torch)."""
    ks = jax.random.split(key, 4)

    def linear(k, fan_in, fan_out):
        kw, kb = jax.random.split(k)
        bound = 1.0 / np.sqrt(fan_in)
        w = jax.random.uniform(kw, (fan_in, fan_out), jnp.float32, -bound, bound)
        b = jax.random.uniform(kb, (fan_out,), jnp.float32, -bound, bound)
        return w, b

    w1, b1 = linear(ks[0], IN_DIM, HIDDEN)
    w2, b2 = linear(ks[1], HIDDEN, HIDDEN)
    w3, b3 = linear(ks[2], HIDDEN, ACTION_DIM)
    emb = jax.random.normal(ks[3], (T_STEPS, HIDDEN), jnp.float32)   # nn.Embedding ~ N(0,1)
    return dict(w1=w1, b1=b1, w2=w2, b2=b2, w3=w3, b3=b3, emb=emb)


def fold_params(raw):
    """One-time algebraic fold + dtype prep for the kernel."""
    w1, b1 = raw["w1"], raw["b1"]
    # Embedding -> first-Linear fold (NO b1 here; b1 stays a separate f32 bias).
    table = jnp.dot(raw["emb"], w1[SA_DIM:], precision=jax.lax.Precision.HIGHEST)  # [25, 256]
    # Combined layer-1 weight rows: 0..16 state, 17..22 action, 23..47 folded table,
    # 48..63 zero (row 63 is the t-carrier lane and must stay zero).
    w1c = jnp.zeros((IN_PACK, HIDDEN), jnp.float32)
    w1c = w1c.at[:SA_DIM].set(w1[:SA_DIM])
    w1c = w1c.at[SA_DIM:SA_DIM + T_STEPS].set(table)
    w1c = w1c.astype(jnp.bfloat16)
    b1f = b1.reshape(1, HIDDEN).astype(jnp.float32)
    w2 = raw["w2"].astype(jnp.bfloat16)
    b2 = raw["b2"].reshape(1, HIDDEN).astype(jnp.float32)
    w3 = jnp.zeros((HIDDEN, OUT_PAD), jnp.float32).at[:, :ACTION_DIM].set(
        raw["w3"]).astype(jnp.bfloat16)
    b3 = jnp.zeros((1, OUT_PAD), jnp.float32).at[:, :ACTION_DIM].set(
        raw["b3"].reshape(1, ACTION_DIM))
    return (w1c, b1f, w2, b2, w3, b3)


def reference_forward_np(state, action_noise, t, raw):
    """Pure-numpy f32 reference of the original module semantics."""
    state = np.asarray(state, np.float32)
    action_noise = np.asarray(action_noise, np.float32)
    t = np.asarray(t)
    emb = np.asarray(raw["emb"], np.float32)
    x = np.concatenate([state, action_noise, emb[t]], axis=1)                 # [B, 279]
    h1 = np.maximum(x @ np.asarray(raw["w1"]) + np.asarray(raw["b1"]), 0.0)
    h2 = np.maximum(h1 @ np.asarray(raw["w2"]) + np.asarray(raw["b2"]), 0.0)
    return h2 @ np.asarray(raw["w3"]) + np.asarray(raw["b3"])


if __name__ == "__main__":
    key = jax.random.PRNGKey(0)
    kp, ks, ka, kt = jax.random.split(key, 4)

    raw = init_raw_params(kp)
    folded = fold_params(raw)

    def check(B, seed_offset):
        ks2, ka2, kt2 = jax.random.split(jax.random.fold_in(key, seed_offset), 3)
        state = jax.random.normal(ks2, (B, STATE_DIM), jnp.float32)
        action_noise = jax.random.normal(ka2, (B, ACTION_DIM), jnp.float32)
        t = jax.random.randint(kt2, (B,), 0, T_STEPS, dtype=jnp.int32)

        out = jax.block_until_ready(forward(state, action_noise, t, folded))
        assert out.shape == (B, ACTION_DIM) and out.dtype == jnp.float32
        assert bool(jnp.all(jnp.isfinite(out)))

        ref = reference_forward_np(state, action_noise, t, raw)
        err = float(np.max(np.abs(np.asarray(out) - ref) / (1.0 + np.abs(ref))))
        assert err < 0.05, f"B={B}: max rel err {err}"

    check(8, 1)    # single-block path
    check(20, 2)   # multi-block / padded-batch path (bb=16, b_pad=32, grid=2)

    print("KERNEL_OK")
</pallas_src>

<mosaic_0001>
module attributes {stable_mosaic.version = 11 : i64} {
  func.func @_actor_kernel(%arg0: i32, %arg1: memref<8x64xbf16, #tpu.memory_space<vmem>>, %arg2: memref<64x256xbf16, #tpu.memory_space<vmem>>, %arg3: memref<1x256xf32, #tpu.memory_space<vmem>>, %arg4: memref<256x256xbf16, #tpu.memory_space<vmem>>, %arg5: memref<1x256xf32, #tpu.memory_space<vmem>>, %arg6: memref<256x128xbf16, #tpu.memory_space<vmem>>, %arg7: memref<1x128xf32, #tpu.memory_space<vmem>>, %arg8: memref<8x128xbf16, #tpu.memory_space<vmem>>) attributes {dimension_semantics = [#tpu.dimension_semantics<parallel>], iteration_bounds = array<i64: 1>, scalar_prefetch = 0 : i64, scratch_operands = 0 : i64, tpu.core_type = #tpu.core_type<tc>, window_params = [{transform_indices = @transform_0, window_bounds = array<i64: 8, 64>}, {pipeline_mode = #tpu.pipeline_mode<synchronous>, transform_indices = @transform_1, window_bounds = array<i64: 64, 256>}, {pipeline_mode = #tpu.pipeline_mode<synchronous>, transform_indices = @transform_2, window_bounds = array<i64: 1, 256>}, {pipeline_mode = #tpu.pipeline_mode<synchronous>, transform_indices = @transform_3, window_bounds = array<i64: 256, 256>}, {pipeline_mode = #tpu.pipeline_mode<synchronous>, transform_indices = @transform_4, window_bounds = array<i64: 1, 256>}, {pipeline_mode = #tpu.pipeline_mode<synchronous>, transform_indices = @transform_5, window_bounds = array<i64: 256, 128>}, {pipeline_mode = #tpu.pipeline_mode<synchronous>, transform_indices = @transform_6, window_bounds = array<i64: 1, 128>}, {transform_indices = @transform_7, window_bounds = array<i64: 8, 128>}]} {
    %c0 = arith.constant 0 : index
    %c0_0 = arith.constant 0 : index
    %0 = vector.load %arg1[%c0, %c0_0] : memref<8x64xbf16, #tpu.memory_space<vmem>>, vector<8x64xbf16>
    %1 = vector.extract_strided_slice %0 {offsets = [0, 63], sizes = [8, 1], strides = [1, 1]} : vector<8x64xbf16> to vector<8x1xbf16>
    %2 = arith.fptosi %1 : vector<8x1xbf16> to vector<8x1xi32>
    %3 = tpu.iota {dimensions = array<i32: 1>} : vector<8x64xi32>
    %c23_i32 = arith.constant 23 : i32
    %4 = vector.broadcast %c23_i32 : i32 to vector<8x1xi32>
    %5 = arith.addi %2, %4 : vector<8x1xi32>
    %6 = vector.broadcast %5 : vector<8x1xi32> to vector<8x64xi32>
    %7 = arith.cmpi eq, %3, %6 : vector<8x64xi32>
    %8 = arith.extui %7 : vector<8x64xi1> to vector<8x64xi32>
    %9 = arith.sitofp %8 : vector<8x64xi32> to vector<8x64xf32>
    %10 = arith.truncf %9 : vector<8x64xf32> to vector<8x64xbf16>
    %11 = arith.addf %0, %10 : vector<8x64xbf16>
    %c0_1 = arith.constant 0 : index
    %c0_2 = arith.constant 0 : index
    %12 = vector.load %arg2[%c0_1, %c0_2] : memref<64x256xbf16, #tpu.memory_space<vmem>>, vector<64x256xbf16>
    %cst = arith.constant dense<0.000000e+00> : vector<8x256xf32>
    %13 = tpu.matmul %11, %12, %cst {dimension_numbers = #tpu.dot_dimension_numbers<[1], [0], [0], [1], [0, 0, 1, 1], [], []>} : vector<8x64xbf16>, vector<64x256xbf16>, vector<8x256xf32> -> vector<8x256xf32>
    %c0_3 = arith.constant 0 : index
    %c0_4 = arith.constant 0 : index
    %14 = vector.load %arg3[%c0_3, %c0_4] : memref<1x256xf32, #tpu.memory_space<vmem>>, vector<1x256xf32>
    %15 = vector.broadcast %14 : vector<1x256xf32> to vector<8x256xf32>
    %16 = arith.addf %13, %15 : vector<8x256xf32>
    %cst_5 = arith.constant 0.000000e+00 : f32
    %17 = vector.broadcast %cst_5 : f32 to vector<8x256xf32>
    %18 = arith.maximumf %16, %17 : vector<8x256xf32>
    %19 = arith.truncf %18 : vector<8x256xf32> to vector<8x256xbf16>
    %c0_6 = arith.constant 0 : index
    %c0_7 = arith.constant 0 : index
    %20 = vector.load %arg4[%c0_6, %c0_7] : memref<256x256xbf16, #tpu.memory_space<vmem>>, vector<256x256xbf16>
    %cst_8 = arith.constant dense<0.000000e+00> : vector<8x256xf32>
    %21 = tpu.matmul %19, %20, %cst_8 {dimension_numbers = #tpu.dot_dimension_numbers<[1], [0], [0], [1], [0, 0, 1, 1], [], []>} : vector<8x256xbf16>, vector<256x256xbf16>, vector<8x256xf32> -> vector<8x256xf32>
    %c0_9 = arith.constant 0 : index
    %c0_10 = arith.constant 0 : index
    %22 = vector.load %arg5[%c0_9, %c0_10] : memref<1x256xf32, #tpu.memory_space<vmem>>, vector<1x256xf32>
    %23 = vector.broadcast %22 : vector<1x256xf32> to vector<8x256xf32>
    %24 = arith.addf %21, %23 : vector<8x256xf32>
    %cst_11 = arith.constant 0.000000e+00 : f32
    %25 = vector.broadcast %cst_11 : f32 to vector<8x256xf32>
    %26 = arith.maximumf %24, %25 : vector<8x256xf32>
    %27 = arith.truncf %26 : vector<8x256xf32> to vector<8x256xbf16>
    %c0_12 = arith.constant 0 : index
    %c0_13 = arith.constant 0 : index
    %28 = vector.load %arg6[%c0_12, %c0_13] : memref<256x128xbf16, #tpu.memory_space<vmem>>, vector<256x128xbf16>
    %cst_14 = arith.constant dense<0.000000e+00> : vector<8x128xf32>
    %29 = tpu.matmul %27, %28, %cst_14 {dimension_numbers = #tpu.dot_dimension_numbers<[1], [0], [0], [1], [0, 0, 1, 1], [], []>} : vector<8x256xbf16>, vector<256x128xbf16>, vector<8x128xf32> -> vector<8x128xf32>
    %c0_15 = arith.constant 0 : index
    %c0_16 = arith.constant 0 : index
    %30 = vector.load %arg7[%c0_15, %c0_16] : memref<1x128xf32, #tpu.memory_space<vmem>>, vector<1x128xf32>
    %31 = vector.broadcast %30 : vector<1x128xf32> to vector<8x128xf32>
    %32 = arith.addf %29, %31 : vector<8x128xf32>
    %33 = arith.truncf %32 : vector<8x128xf32> to vector<8x128xbf16>
    %c0_17 = arith.constant 0 : index
    %c0_18 = arith.constant 0 : index
    %34 = vector.load %arg8[%c0_17, %c0_18] : memref<8x128xbf16, #tpu.memory_space<vmem>>, vector<8x128xbf16>
    tpu.vector_store %arg8[%c0_17, %c0_18], %33 {strides = array<i32>} : memref<8x128xbf16, #tpu.memory_space<vmem>>, vector<8x128xbf16>,
    return
  }
  func.func @transform_0(%arg0: i32) -> (i32, i32) {
    %c0_i32 = arith.constant 0 : i32
    %c0_i32_0 = arith.constant 0 : i32
    return %arg0, %c0_i32 : i32, i32
  }
  func.func @transform_1(%arg0: i32) -> (i32, i32) {
    %c0_i32 = arith.constant 0 : i32
    %c0_i32_0 = arith.constant 0 : i32
    %c0_i32_1 = arith.constant 0 : i32
    return %c0_i32, %c0_i32_0 : i32, i32
  }
  func.func @transform_2(%arg0: i32) -> (i32, i32) {
    %c0_i32 = arith.constant 0 : i32
    %c0_i32_0 = arith.constant 0 : i32
    %c0_i32_1 = arith.constant 0 : i32
    return %c0_i32, %c0_i32_0 : i32, i32
  }
  func.func @transform_3(%arg0: i32) -> (i32, i32) {
    %c0_i32 = arith.constant 0 : i32
    %c0_i32_0 = arith.constant 0 : i32
    %c0_i32_1 = arith.constant 0 : i32
    return %c0_i32, %c0_i32_0 : i32, i32
  }
  func.func @transform_4(%arg0: i32) -> (i32, i32) {
    %c0_i32 = arith.constant 0 : i32
    %c0_i32_0 = arith.constant 0 : i32
    %c0_i32_1 = arith.constant 0 : i32
    return %c0_i32, %c0_i32_0 : i32, i32
  }
  func.func @transform_5(%arg0: i32) -> (i32, i32) {
    %c0_i32 = arith.constant 0 : i32
    %c0_i32_0 = arith.constant 0 : i32
    %c0_i32_1 = arith.constant 0 : i32
    return %c0_i32, %c0_i32_0 : i32, i32
  }
  func.func @transform_6(%arg0: i32) -> (i32, i32) {
    %c0_i32 = arith.constant 0 : i32
    %c0_i32_0 = arith.constant 0 : i32
    %c0_i32_1 = arith.constant 0 : i32
    return %c0_i32, %c0_i32_0 : i32, i32
  }
  func.func @transform_7(%arg0: i32) -> (i32, i32) {
    %c0_i32 = arith.constant 0 : i32
    %c0_i32_0 = arith.constant 0 : i32
    return %arg0, %c0_i32 : i32, i32
  }
}

</mosaic_0001>

<bundles_post_ra>
// kernel: diffusion_actor_forward.1
= control target key start
LH: loop header
LB: loop body
LE: loop exit
PB: predicated region body
PF: predicated region fallthrough
CT: control target
= control target key end

     0   :  { %12 = vsyncpa [#allocation3], 0  ;;  %s1052_s0 = inlined_call_operand.vmem [shape: bf16[8,64], index: 0, kind: input, shape index: {}]   ;;  %s1053_s1 = inlined_call_operand.hbm [shape: bf16[64,256], index: 1, kind: input, shape index: {}]   ;;  %s1054_s2 = inlined_call_operand.vmem [shape: f32[1,256], index: 2, kind: input, shape index: {}]   ;;  %s1055_s3 = inlined_call_operand.hbm [shape: bf16[256,256], index: 3, kind: input, shape index: {}]   ;;  %s1056_s4 = inlined_call_operand.vmem [shape: f32[1,256], index: 4, kind: input, shape index: {}]   ;;  %s1057_s5 = inlined_call_operand.hbm [shape: bf16[256,128], index: 5, kind: input, shape index: {}]   ;;  %s1058_s6 = inlined_call_operand.vmem [shape: f32[1,128], index: 6, kind: input, shape index: {}]   ;;  %s1059_s7 = inlined_call_operand.vmem [shape: bf16[8,128], index: 7, kind: output, shape index: {}]  }
   0x1   :  { %13 = vsyncpa [#allocation5], 0  ;;  %s35_s26 = sshll.u32 %s1055_s3, 4  ;;  %s973_s27 = smov [#allocation4]   ;;  %s36_s26 = int_to_ptr.hbm [resolvable:$true] %s35_s26 }
   0x2   :  { %s37_s28 = sshll.u32 %s973_s27, 4  ;;  %s20_s8 = sshll.u32 %s1053_s1, 4  ;;  %s38_s28 = int_to_ptr.vmem [resolvable:$true] %s37_s28  ;;  %s21_s8 = int_to_ptr.hbm [resolvable:$true] %s20_s8 }
   0x3   :  { %s974_s9 = smov 128   ;;  %s975_s10 = smov 8  }
   0x4   :  { %43 = dma.hbm_to_vmem [thread:$0]  %s36_s26, 4096, %s38_s28, [#allocation5], %s974_s9, %s974_s9, %s975_s10  }
   0x5   :  { %s976_s11 = smov [#allocation2]   ;;  %s50_s15 = sshll.u32 %s1057_s5, 4  ;;  %s51_s15 = int_to_ptr.hbm [resolvable:$true] %s50_s15 }
   0x6   :  { %s22_s12 = sshll.u32 %s976_s11, 4  ;;  %s977_s3 = smov [#allocation6]   ;;  %s23_s12 = int_to_ptr.vmem [resolvable:$true] %s22_s12 }
   0x7   :  { %28 = dma.hbm_to_vmem [thread:$0]  %s21_s8, 1024, %s23_s12, [#allocation3], %s974_s9, %s974_s9, %s975_s10  }
   0x8   :  { %s52_s16 = sshll.u32 %s977_s3, 4  ;;  %s978_s17 = smov 64   ;;  %s53_s16 = int_to_ptr.vmem [resolvable:$true] %s52_s16 }
   0x9   :  { %s979_s18 = smov 4  }
   0xa   :  { %58 = dma.hbm_to_vmem [thread:$0]  %s51_s15, 2048, %s53_s16, [#allocation5], %s978_s17, %s978_s17, %s979_s18  }
   0xb   :  { %969 = dma.done.wait [#allocation3], 1024  }
   0xc   :  { %970 = vsyncadd [#allocation3], 4294966272 }
   0xd   :  { %971 = dma.done.wait [#allocation5], 6144  }
   0xe   :  { %972 = vsyncadd [#allocation5], 4294961152  ;;  %v980_v0 = vmov 63   ;;  %v74_v1 = vld [vmem:[%s1052_s0] sm:$0xf]  ;;  %vm144_vm2 = vcmask 523264  }
   0xf   :  { %895 = vset.pattern.permute.xlu0 %v980_v0  ;;  %v625_v2 = vld [vmem:[#allocation2 + $0x30] sm:$0xf]  ;;  %v832_v3 = vld [vmem:[#allocation2 + $0x34] sm:$0xf0]  ;;  %v1034_v4 = vunpack.c.l.bf16 %v74_v1  ;;  %v831_v6 = vld [vmem:[#allocation2 + $0x34] sm:$0xf] }
  0x10   :  { %v626_v5 = vor.u32 %v832_v3, %v625_v2  ;;  %v627_v7 = vld [vmem:[#allocation2 + $0x38] sm:$0xf0]  ;;  %v617_v8 = vld [vmem:[#allocation2 + $0x20] sm:$0xf]  ;;  %v830_v10 = vld [vmem:[#allocation2 + $0x24] sm:$0xf0] }
  0x11   :  { %v630_v9 = vor.u32 %v831_v6, %v627_v7  ;;  %v829_v11 = vld [vmem:[#allocation2 + $0x24] sm:$0xf]  ;;  %v619_v12 = vld [vmem:[#allocation2 + $0x28] sm:$0xf0]  ;;  %vm881_vm0 = vcmp.lt.s32.totalorder %v1034_v4, 0  ;;  %v882_v13 = vceil.f32 %v1034_v4  ;;  %v883_v14 = vfloor.f32 %v1034_v4 }
  0x12   :  { %152 = vmatpush.bf16.msra.mxu0 %v626_v5  ;;  %v618_v15 = vor.u32 %v830_v10, %v617_v8  ;;  %v622_v16 = vor.u32 %v829_v11, %v619_v12  ;;  %v609_v17 = vld [vmem:[#allocation2 + $0x10] sm:$0xf]  ;;  %v828_v18 = vld [vmem:[#allocation2 + $0x14] sm:$0xf0]  ;;  %v827_v20 = vld [vmem:[#allocation2 + $0x14] sm:$0xf] }
  0x13   :  { %165 = vmatpush.bf16.msra.mxu1 %v630_v9  ;;  %v884_v19 = vsel %vm881_vm0, %v882_v13, %v883_v14  ;;  %v611_v21 = vld [vmem:[#allocation2 + $0x18] sm:$0xf0]  ;;  %v610_v23 = vor.u32 %v828_v18, %v609_v17  ;;  %v601_v26 = vld [vmem:[#allocation2] sm:$0xf]  ;;  %v826_v27 = vld [vmem:[#allocation2 + $0x4] sm:$0xf0] }
  0x14   :  { %v885_v22 = vcvt.f32.s32 %v884_v19  ;;  %v614_v25 = vor.u32 %v827_v20, %v611_v21  ;;  %v825_v28 = vld [vmem:[#allocation2 + $0x4] sm:$0xf]  ;;  %v602_v29 = vor.u32 %v826_v27, %v601_v26  ;;  %v603_v30 = vld [vmem:[#allocation2 + $0x8] sm:$0xf0]  ;;  %v691_v32 = vld [vmem:[#allocation4 + $0x70] sm:$0xf] }
  0x15   :  { %v606_v31 = vor.u32 %v825_v28, %v603_v30  ;;  %v848_v33 = vld [vmem:[#allocation4 + $0x74] sm:$0xf0]  ;;  %v755_v34 = vld [vmem:[#allocation4 + $0xf0] sm:$0xf]  ;;  %v847_v37 = vld [vmem:[#allocation4 + $0x74] sm:$0xf] }
  0x16   :  { %153 = vmatpush.bf16.msra.mxu0 %v618_v15  ;;  %v79_v24 = vadd.s32 23, %v885_v22  ;;  %v692_v35 = vor.u32 %v848_v33, %v691_v32  ;;  %v864_v36 = vld [vmem:[#allocation4 + $0xf4] sm:$0xf0]  ;;  %v693_v38 = vld [vmem:[#allocation4 + $0x78] sm:$0xf0] }
  0x17   :  { %166 = vmatpush.bf16.msra.mxu1 %v622_v16  ;;  %v756_v39 = vor.u32 %v864_v36, %v755_v34  ;;  %v696_v40 = vor.u32 %v847_v37, %v693_v38  ;;  %v863_v41 = vld [vmem:[#allocation4 + $0xf4] sm:$0xf]  ;;  %v757_v42 = vld [vmem:[#allocation4 + $0xf8] sm:$0xf0]  ;;  %v683_v43 = vld [vmem:[#allocation4 + $0x60] sm:$0xf] }
  0x18   :  { %81 = vperm.xlu0 %895, %v79_v24   ;;  %376 = vmatpush.bf16.msra.mxu2 %v692_v35  ;;  %v760_v44 = vor.u32 %v863_v41, %v757_v42  ;;  %v846_v45 = vld [vmem:[#allocation4 + $0x64] sm:$0xf0]  ;;  %v747_v46 = vld [vmem:[#allocation4 + $0xe0] sm:$0xf]  ;;  %v845_v50 = vld [vmem:[#allocation4 + $0x64] sm:$0xf]  ;;  %v77_v35 = vlaneseq }
  0x19   :  { %v862_v47 = vld [vmem:[#allocation4 + $0xe4] sm:$0xf0]  ;;  %389 = vmatpush.bf16.msra.mxu3 %v756_v39  ;;  %v684_v48 = vor.u32 %v846_v45, %v683_v43  ;;  %v685_v51 = vld [vmem:[#allocation4 + $0x68] sm:$0xf0]  ;;  %v861_v52 = vld [vmem:[#allocation4 + $0xe4] sm:$0xf] }
  0x1a   :  { %154 = vmatpush.bf16.msra.mxu0 %v610_v23  ;;  %v748_v49 = vor.u32 %v862_v47, %v747_v46  ;;  %v688_v53 = vor.u32 %v845_v50, %v685_v51  ;;  %v749_v54 = vld [vmem:[#allocation4 + $0xe8] sm:$0xf0]  ;;  %v675_v55 = vld [vmem:[#allocation4 + $0x50] sm:$0xf]  ;;  %v844_v56 = vld [vmem:[#allocation4 + $0x54] sm:$0xf0] }
  0x1b   :  { %167 = vmatpush.bf16.msra.mxu1 %v614_v25  ;;  %v752_v57 = vor.u32 %v861_v52, %v749_v54  ;;  %v739_v58 = vld [vmem:[#allocation4 + $0xd0] sm:$0xf]  ;;  %v860_v59 = vld [vmem:[#allocation4 + $0xd4] sm:$0xf0]  ;;  %v843_v60 = vld [vmem:[#allocation4 + $0x54] sm:$0xf]  ;;  %v676_v61 = vor.u32 %v844_v56, %v675_v55 }
  0x1c   :  { %377 = vmatpush.bf16.msra.mxu2 %v684_v48  ;;  %v677_v62 = vld [vmem:[#allocation4 + $0x58] sm:$0xf0]  ;;  %v859_v63 = vld [vmem:[#allocation4 + $0xd4] sm:$0xf]  ;;  %v740_v1 = vor.u32 %v860_v59, %v739_v58  ;;  %v667_v3 = vld [vmem:[#allocation4 + $0x40] sm:$0xf] }
  0x1d   :  { %v741_v0 = vld [vmem:[#allocation4 + $0xd8] sm:$0xf0]  ;;  %390 = vmatpush.bf16.msra.mxu3 %v748_v49  ;;  %v680_v2 = vor.u32 %v843_v60, %v677_v62  ;;  %v842_v5 = vld [vmem:[#allocation4 + $0x44] sm:$0xf0]  ;;  %v731_v6 = vld [vmem:[#allocation4 + $0xc0] sm:$0xf] }
  0x1e   :  { %155 = vmatpush.bf16.msra.mxu0 %v602_v29  ;;  %v744_v7 = vor.u32 %v859_v63, %v741_v0  ;;  %v858_v8 = vld [vmem:[#allocation4 + $0xc4] sm:$0xf0]  ;;  %v841_v9 = vld [vmem:[#allocation4 + $0x44] sm:$0xf]  ;;  %v669_v10 = vld [vmem:[#allocation4 + $0x48] sm:$0xf0]  ;;  %v668_v13 = vor.u32 %v842_v5, %v667_v3 }
  0x1f   :  { %168 = vmatpush.bf16.msra.mxu1 %v606_v31  ;;  %v857_v11 = vld [vmem:[#allocation4 + $0xc4] sm:$0xf]  ;;  %v733_v12 = vld [vmem:[#allocation4 + $0xc8] sm:$0xf0]  ;;  %v732_v14 = vor.u32 %v858_v8, %v731_v6  ;;  %v672_v15 = vor.u32 %v841_v9, %v669_v10  ;;  %v659_v16 = vld [vmem:[#allocation4 + $0x30] sm:$0xf] }
  0x20   :  { %378 = vmatpush.bf16.msra.mxu2 %v676_v61  ;;  %v840_v17 = vld [vmem:[#allocation4 + $0x34] sm:$0xf0]  ;;  %v723_v18 = vld [vmem:[#allocation4 + $0xb0] sm:$0xf]  ;;  %v736_v19 = vor.u32 %v857_v11, %v733_v12  ;;  %v839_v21 = vld [vmem:[#allocation4 + $0x34] sm:$0xf] }
  0x21   :  { %391 = vmatpush.bf16.msra.mxu3 %v740_v1  ;;  %v856_v20 = vld [vmem:[#allocation4 + $0xb4] sm:$0xf0]  ;;  %v661_v22 = vld [vmem:[#allocation4 + $0x38] sm:$0xf0]  ;;  %v855_v23 = vld [vmem:[#allocation4 + $0xb4] sm:$0xf]  ;;  %v660_v25 = vor.u32 %v840_v17, %v659_v16 }
  0x22   :  { %402 = vmatpush.bf16.msrb.mxu0 %v696_v40  ;;  %v725_v24 = vld [vmem:[#allocation4 + $0xb8] sm:$0xf0]  ;;  %v724_v26 = vor.u32 %v856_v20, %v723_v18  ;;  %v664_v27 = vor.u32 %v839_v21, %v661_v22  ;;  %v651_v28 = vld [vmem:[#allocation4 + $0x20] sm:$0xf]  ;;  %v838_v29 = vld [vmem:[#allocation4 + $0x24] sm:$0xf0] }
  0x23   :  { %415 = vmatpush.bf16.msrb.mxu1 %v760_v44  ;;  %v715_v30 = vld [vmem:[#allocation4 + $0xa0] sm:$0xf]  ;;  %v728_v31 = vor.u32 %v855_v23, %v725_v24  ;;  %v854_v32 = vld [vmem:[#allocation4 + $0xa4] sm:$0xf0]  ;;  %v837_v33 = vld [vmem:[#allocation4 + $0x24] sm:$0xf]  ;;  %v652_v38 = vor.u32 %v838_v29, %v651_v28 }
  0x24   :  { %379 = vmatpush.bf16.msra.mxu2 %v668_v13  ;;  %v653_v34 = vld [vmem:[#allocation4 + $0x28] sm:$0xf0]  ;;  %v853_v36 = vld [vmem:[#allocation4 + $0xa4] sm:$0xf]  ;;  %v716_v39 = vor.u32 %v854_v32, %v715_v30  ;;  %v78_v42 = vand.u32 127, %v77_v35  ;;  %v981_v44 = vmov 0.0  }
  0x25   :  { %392 = vmatpush.bf16.msra.mxu3 %v732_v14  ;;  %v717_v37 = vld [vmem:[#allocation4 + $0xa8] sm:$0xf0]  ;;  %v656_v40 = vor.u32 %v837_v33, %v653_v34  ;;  %v643_v48 = vld [vmem:[#allocation4 + $0x10] sm:$0xf]  ;;  %v836_v49 = vld [vmem:[#allocation4 + $0x14] sm:$0xf0] }
  0x26   :  { %403 = vmatpush.bf16.msrb.mxu0 %v688_v53  ;;  %v720_v41 = vor.u32 %v853_v36, %v717_v37  ;;  %v707_v50 = vld [vmem:[#allocation4 + $0x90] sm:$0xf]  ;;  %v644_v51 = vor.u32 %v836_v49, %v643_v48  ;;  %v852_v52 = vld [vmem:[#allocation4 + $0x94] sm:$0xf0]  ;;  %v835_v53 = vld [vmem:[#allocation4 + $0x14] sm:$0xf] }
  0x27   :  { %416 = vmatpush.bf16.msrb.mxu1 %v752_v57  ;;  %v645_v54 = vld [vmem:[#allocation4 + $0x18] sm:$0xf0]  ;;  %v708_v55 = vor.u32 %v852_v52, %v707_v50  ;;  %v851_v57 = vld [vmem:[#allocation4 + $0x94] sm:$0xf]  ;;  %v834_v60 = vld [vmem:[#allocation4 + $0x4] sm:$0xf0] }
  0x28   :  { %380 = vmatpush.bf16.msra.mxu2 %v660_v25  ;;  %v648_v56 = vor.u32 %v835_v53, %v645_v54  ;;  %v709_v58 = vld [vmem:[#allocation4 + $0x98] sm:$0xf0]  ;;  %v699_v61 = vld [vmem:[#allocation4 + $0x80] sm:$0xf]  ;;  %v850_v63 = vld [vmem:[#allocation4 + $0x84] sm:$0xf0] }
  0x29   :  { %393 = vmatpush.bf16.msra.mxu3 %v724_v26  ;;  %v712_v59 = vor.u32 %v851_v57, %v709_v58  ;;  %v833_v0 = vld [vmem:[#allocation4 + $0x4] sm:$0xf]  ;;  %v637_v1 = vld [vmem:[#allocation4 + $0x8] sm:$0xf0]  ;;  %v880_v8 = vld [vmem:[#allocation6 + $0x78] sm:$0xff] }
  0x2a   :  { %404 = vmatpush.bf16.msrb.mxu0 %v680_v2  ;;  %v700_v2 = vor.u32 %v850_v63, %v699_v61  ;;  %v640_v3 = vor.u32 %v833_v0, %v637_v1  ;;  %v849_v5 = vld [vmem:[#allocation4 + $0x84] sm:$0xf]  ;;  %v701_v6 = vld [vmem:[#allocation4 + $0x88] sm:$0xf0]  ;;  %v872_v9 = vld [vmem:[#allocation6 + $0x38] sm:$0xff] }
  0x2b   :  { %417 = vmatpush.bf16.msrb.mxu1 %v744_v7  ;;  %v704_v7 = vor.u32 %v849_v5, %v701_v6  ;;  %v879_v10 = vld [vmem:[#allocation6 + $0x70] sm:$0xff]  ;;  %v878_v12 = vld [vmem:[#allocation6 + $0x68] sm:$0xff]  ;;  %v877_v14 = vld [vmem:[#allocation6 + $0x60] sm:$0xff] }
  0x2c   :  { %381 = vmatpush.bf16.msra.mxu2 %v652_v38  ;;  %v871_v11 = vld [vmem:[#allocation6 + $0x30] sm:$0xff]  ;;  %v870_v13 = vld [vmem:[#allocation6 + $0x28] sm:$0xff]  ;;  %v876_v16 = vld [vmem:[#allocation6 + $0x58] sm:$0xff] }
  0x2d   :  { %394 = vmatpush.bf16.msra.mxu3 %v716_v39  ;;  %v98_v17 = vld [vmem:[%s1054_s2] sm:$0x3]  ;;  %v875_v18 = vld [vmem:[#allocation6 + $0x50] sm:$0xff]  ;;  %v874_v32 = vld [vmem:[#allocation6 + $0x48] sm:$0xff] }
  0x2e   :  { %405 = vmatpush.bf16.msrb.mxu0 %v672_v15  ;;  %v869_v15 = vld [vmem:[#allocation6 + $0x20] sm:$0xff]  ;;  %v101_v20 = vperm.slane %v98_v17, 1  ;;  %v867_v33 = vld [vmem:[#allocation6 + $0x10] sm:$0xff]  ;;  %v866_v35 = vld [vmem:[#allocation6 + $0x8] sm:$0xff] }
  0x2f   :  { %418 = vmatpush.bf16.msrb.mxu1 %v736_v19  ;;  %v100_v19 = vperm.slane %v98_v17, 0  ;;  %v873_v34 = vld [vmem:[#allocation6 + $0x40] sm:$0xff] }
  0x30   :  { %382 = vmatpush.bf16.msra.mxu2 %v644_v51  ;;  %v865_v36 = vld [vmem:[#allocation6] sm:$0xff] }
  0x31   :  { %395 = vmatpush.bf16.msra.mxu3 %v708_v55  ;;  %v210_v37 = vld [vmem:[%s1056_s4] sm:$0x3] }
  0x32   :  { %406 = vmatpush.bf16.msrb.mxu0 %v664_v27  ;;  %v213_v38 = vperm.slane %v210_v37, 1  ;;  %v896_v57 = vld [vmem:[%s1058_s6] ss:$0 sm:$0xff] }
  0x33   :  { %419 = vmatpush.bf16.msrb.mxu1 %v728_v31  ;;  %v868_v31 = vld [vmem:[#allocation6 + $0x18] sm:$0xff] }
  0x35   :  { %396 = vmatpush.bf16.msra.mxu3 %v700_v2 }
  0x36   :  { %407 = vmatpush.bf16.msrb.mxu0 %v656_v40 }
  0x37   :  { %420 = vmatpush.bf16.msrb.mxu1 %v720_v41 }
  0x39   :  { %577 = vmatpush.bf16.msrb.mxu3 %v880_v8 }
  0x3a   :  { %408 = vmatpush.bf16.msrb.mxu0 %v648_v56 }
  0x3b   :  { %421 = vmatpush.bf16.msrb.mxu1 %v712_v59 }
  0x3d   :  { %578 = vmatpush.bf16.msrb.mxu3 %v879_v10 }
  0x3e   :  { %409 = vmatpush.bf16.msrb.mxu0 %v640_v3 }
  0x3f   :  { %422 = vmatpush.bf16.msrb.mxu1 %v704_v7 }
  0x41   :  { %579 = vmatpush.bf16.msrb.mxu3 %v878_v12 }
  0x45   :  { %580 = vmatpush.bf16.msrb.mxu3 %v877_v14 }
  0x49   :  { %581 = vmatpush.bf16.msrb.mxu3 %v876_v16 }
  0x4d   :  { %582 = vmatpush.bf16.msrb.mxu3 %v875_v18 }
  0x51   :  { %583 = vmatpush.bf16.msrb.mxu3 %v874_v32 }
  0x55   :  { %584 = vmatpush.bf16.msrb.mxu3 %v873_v34 }
  0x8a   :  { %v82_v43 = vpop.permute.xlu0 %81 }
  0x8b   :  { %vm83_vm1 = vcmp.eq.s32.totalorder %v78_v42, %v82_v43  ;;  %v212_v42 = vperm.slane %v210_v37, 0 }
  0x8c   :  { %v598_v45 = vsel %vm83_vm1, 1.0, %v981_v44 }
  0x8d   :  { %v88_v46 = vadd.f32 %v598_v45, %v1034_v4  ;;  %v635_v4 = vld [vmem:[#allocation4] sm:$0xf] }
  0x8e   :  { %v636_v62 = vor.u32 %v834_v60, %v635_v4 }
  0x8f   :  { %v89_v47 = vpack.c.bf16 %v88_v46, %v88_v46 }
  0x90   :  { %383 = vmatpush.bf16.msra.mxu2 %v636_v62 }
  0x91   :  { %631 = vmatmul.msk.bf16.vlgmr.msra.gmra.mxu0 %vm144_vm2, %v89_v47  ;;  %632 = vmatmul.msk.bf16.vlgmr.msra.gmra.mxu1 %vm144_vm2, %v89_v47 }
  0x94   :  { %564 = vmatpush.bf16.msrb.mxu2 %v872_v9 }
  0x98   :  { %565 = vmatpush.bf16.msrb.mxu2 %v871_v11 }
  0x9c   :  { %566 = vmatpush.bf16.msrb.mxu2 %v870_v13 }
  0xa0   :  { %567 = vmatpush.bf16.msrb.mxu2 %v869_v15 }
  0xa4   :  { %568 = vmatpush.bf16.msrb.mxu2 %v868_v31 }
  0xa8   :  { %569 = vmatpush.bf16.msrb.mxu2 %v867_v33 }
  0xac   :  { %570 = vmatpush.bf16.msrb.mxu2 %v866_v35 }
  0xb0   :  { %571 = vmatpush.bf16.msrb.mxu2 %v865_v36 }
 0x10e   :  { %v157_v21 = vpop.f32.mrf.mxu0  ;;  %v170_v22 = vpop.f32.mrf.mxu1 }
 0x10f   :  { %v158_v23 = vadd.f32 %v157_v21, %v100_v19  ;;  %v171_v24 = vadd.f32 %v170_v22, %v101_v20 }
 0x111   :  { %v174_v25 = vmax.f32 %v158_v23, 0.0  ;;  %v175_v26 = vmax.f32 %v171_v24, 0.0 }
 0x113   :  { %v176_v27 = vpack.c.bf16 %v174_v25, %v174_v25  ;;  %v177_v28 = vpack.c.bf16 %v175_v26, %v175_v26 }
 0x115   :  { %384 = vmatmul.bf16.vlgmr.msra.gmra.mxu2 %v176_v27  ;;  %397 = vmatmul.bf16.vlgmr.msra.gmra.mxu3 %v177_v28 }
 0x116   :  { %410 = vmatmul.bf16.vlgmr.msrb.gmra.mxu0 %v176_v27  ;;  %423 = vmatmul.bf16.vlgmr.msrb.gmra.mxu1 %v177_v28  ;;  %v159_v29 = vpop.f32.mrf.mxu0  ;;  %v172_v30 = vpop.f32.mrf.mxu1 }
 0x193   :  { %v411_v39 = vpop.f32.mrf.mxu0  ;;  %v424_v40 = vpop.f32.mrf.mxu1 }
 0x194   :  { %v412_v41 = vadd.f32 %v411_v39, %v213_v38 }
 0x196   :  { %v425_v43 = vadd.f32 %v424_v40, %v412_v41 }
 0x198   :  { %v429_v44 = vmax.f32 %v425_v43, 0.0  ;;  %v385_v45 = vpop.f32.mrf.mxu2  ;;  %v398_v46 = vpop.f32.mrf.mxu3 }
 0x199   :  { %v386_v47 = vadd.f32 %v385_v45, %v212_v42 }
 0x19a   :  { %v431_v48 = vpack.c.bf16 %v429_v44, %v429_v44 }
 0x19b   :  { %v399_v49 = vadd.f32 %v398_v46, %v386_v47  ;;  %v413_v50 = vpop.f32.mrf.mxu0  ;;  %v426_v51 = vpop.f32.mrf.mxu1 }
 0x19c   :  { %585 = vmatmul.bf16.vlgmr.msrb.gmra.mxu3 %v431_v48 }
 0x19d   :  { %v428_v52 = vmax.f32 %v399_v49, 0.0 }
 0x19f   :  { %v430_v53 = vpack.c.bf16 %v428_v52, %v428_v52 }
 0x1a0   :  { %v387_v54 = vpop.f32.mrf.mxu2  ;;  %v400_v55 = vpop.f32.mrf.mxu3 }
 0x1a1   :  { %572 = vmatmul.bf16.vlgmr.msrb.gmra.mxu2 %v430_v53 }
 0x21f   :  { %v586_v56 = vpop.f32.mrf.mxu3 }
 0x224   :  { %v573_v58 = vpop.f32.mrf.mxu2 }
 0x225   :  { %v574_v59 = vadd.f32 %v896_v57, %v573_v58 }
 0x227   :  { %v587_v4 = vadd.f32 %v586_v56, %v574_v59  ;;  %v588_v60 = vpop.f32.mrf.mxu3 }
 0x229   :  { %v590_v61 = vpack.c.bf16 %v587_v4, %v587_v4 }
 0x22b   :  { %591 = vst [vmem:[%s1059_s7] sm:$0xf] %v590_v61 }
 0x22c   :  { %v575_v62 = vpop.f32.mrf.mxu2 }
 0x22d   :  { %596 = vsyncpa [#allocation3], 1 }
 0x22e   :  { %597 = vsyncpa [#allocation5], 1 }

</bundles_post_ra>
